<compile_context>
chip_gen: v7x
topology: tpu7x:2x2x1
jax: 0.10.0
libtpu: 0.0.40
codegen_flags: <defaults>
</compile_context>

<pallas_src>
import functools
import math

import jax
import jax.numpy as jnp
from jax.experimental import pallas as pl
from jax.experimental.pallas import tpu as pltpu


def _round_up(x, m):
    return (x + m - 1) // m * m


# ------------------------------- Pallas kernel -------------------------------

def _ann_fused_kernel(x_ref, w1_ref, b1_ref, w2_ref, b2_ref, w3_ref, b3_ref,
                      o_ref, *, activation, bf16_relu):
    # x: (tm, Din) f32; w*: bf16 (K, N) pre-transposed/padded; b*: f32 (1, N)
    x = x_ref[...].astype(jnp.bfloat16)

    def relu_bf16(h_f32):
        if bf16_relu:
            # v6e/v7x: packed bf16 VALU, 2 rows per vreg op. relu/round commute.
            return jnp.maximum(h_f32.astype(jnp.bfloat16), jnp.bfloat16(0.0))
        return jnp.maximum(h_f32, 0.0).astype(jnp.bfloat16)

    h = jnp.dot(x, w1_ref[...], preferred_element_type=jnp.float32) + b1_ref[...]
    h = relu_bf16(h)

    h = jnp.dot(h, w2_ref[...], preferred_element_type=jnp.float32) + b2_ref[...]
    h = relu_bf16(h)

    # Logits stay f32 through max/exp: required so padded columns (bias=-1e30)
    # underflow to exactly 0 in the softmax denominator.
    logits = jnp.dot(h, w3_ref[...], preferred_element_type=jnp.float32) + b3_ref[...]

    if activation == "softmax":
        m = jnp.max(logits, axis=1, keepdims=True)
        e = jnp.exp(logits - m)                            # EUP
        denom = jnp.sum(e, axis=1, keepdims=True)
        o_ref[...] = e * pl.reciprocal(denom, approx=True)  # EUP vrcp
    elif activation == "sigmoid":
        e = jnp.exp(-logits)
        o_ref[...] = pl.reciprocal(1.0 + e, approx=True)
    else:                                                  # regression: identity
        o_ref[...] = logits


# ------------------------------ hardware helpers -------------------------------

@functools.lru_cache(maxsize=1)
def _vmem_limit_bytes():
    """Per-generation scoped-VMEM budget with headroom (v5e/v6e ~112 MiB,
    v7x ~56 MiB). Falls back to a conservative 56 MiB if the query fails."""
    default_cap = 64 * 1024 * 1024
    try:
        info = pltpu.get_tpu_info()
        cap = int(getattr(info, "vmem_capacity_bytes", default_cap))
    except Exception:
        cap = default_cap
    budget = cap - cap // 8                      # leave ~1/8 for compiler scratch
    return max(32 * 1024 * 1024, min(budget, 112 * 1024 * 1024))


@functools.lru_cache(maxsize=1)
def _bf16_elementwise():
    """bf16 VALU exists on v6e/v7x; keep f32 elementwise on older chips."""
    try:
        kind = jax.devices()[0].device_kind.lower()
    except Exception:
        return False
    return ("v6" in kind) or ("v7" in kind)


# ------------------------------ parameter prep --------------------------------

def init_params(key, input_size, hidden_size, output_size):
    """PyTorch nn.Linear-style init, weights stored (out, in) like torch."""
    ks = jax.random.split(key, 6)

    def lin(kw, kb, fan_in, fan_out):
        bound = 1.0 / math.sqrt(fan_in)
        w = jax.random.uniform(kw, (fan_out, fan_in), jnp.float32, -bound, bound)
        b = jax.random.uniform(kb, (fan_out,), jnp.float32, -bound, bound)
        return w, b

    w1, b1 = lin(ks[0], ks[1], input_size, hidden_size)
    w2, b2 = lin(ks[2], ks[3], hidden_size, hidden_size)
    w3, b3 = lin(ks[4], ks[5], hidden_size, output_size)
    return {"w1": w1, "b1": b1, "w2": w2, "b2": b2, "w3": w3, "b3": b3}


def prepare_params(raw, problem, output_size):
    """One-time transform: transpose to (K, N), pad to lane-dense (128) widths,
    cast weights to bf16.  Done outside the steady-state forward path."""
    hidden = raw["w1"].shape[0]
    din = raw["w1"].shape[1]
    hp = _round_up(hidden, 128)
    np_ = _round_up(max(output_size, 1), 128)

    def pad_w(w_t, rows, cols):                  # w_t is already (K, N)
        return jnp.pad(w_t, ((0, rows - w_t.shape[0]), (0, cols - w_t.shape[1])))

    w1 = pad_w(raw["w1"].T, din, hp).astype(jnp.bfloat16)          # (Din, Hp)
    w2 = pad_w(raw["w2"].T, hp, hp).astype(jnp.bfloat16)           # (Hp,  Hp)
    w3 = pad_w(raw["w3"].T, hp, np_).astype(jnp.bfloat16)          # (Hp,  Np)

    b1 = jnp.pad(raw["b1"], (0, hp - hidden)).reshape(1, hp).astype(jnp.float32)
    b2 = jnp.pad(raw["b2"], (0, hp - hidden)).reshape(1, hp).astype(jnp.float32)

    if problem == "classification" and output_size > 1:
        activation = "softmax"
        pad_val = -1e30                          # padded logits -> exp() == 0
    elif problem == "classification" and output_size == 1:
        activation = "sigmoid"
        pad_val = 0.0
    else:
        activation = "none"
        pad_val = 0.0
    b3 = jnp.pad(raw["b3"], (0, np_ - output_size), constant_values=pad_val)
    b3 = b3.reshape(1, np_).astype(jnp.float32)

    prepared = {"w1": w1, "b1": b1, "w2": w2, "b2": b2, "w3": w3, "b3": b3}
    return prepared, activation


# ------------------------------- forward pass ----------------------------------

_SINGLE_BUFFER_WEIGHTS_OK = None   # cache: does this JAX accept pl.Buffered(1)?


def ann_forward(x, params, activation, output_size, tm=512):
    """x: (B, input_size) f32 -> (B, output_size) f32."""
    global _SINGLE_BUFFER_WEIGHTS_OK

    M, din = x.shape
    hp = params["w1"].shape[1]
    np_ = params["w3"].shape[1]

    # ---- batch tiling: big tiles to amortize per-step overhead, but >= 2 grid
    # steps (when the batch allows) so v7x's 2 TensorCores both get work. ----
    mp8 = _round_up(M, 8)
    tile = min(tm, mp8)
    if mp8 >= 16:
        tile = min(tile, _round_up((mp8 + 1) // 2, 8))
    if tile >= 256:
        tile = tile // 256 * 256                 # MXU-friendly on v6e/v7x
    elif tile >= 128:
        tile = tile // 128 * 128
    tile = max(_round_up(tile, 8), 8)
    mp = _round_up(M, tile)
    if mp != M:
        x = jnp.pad(x, ((0, mp - M), (0, 0)))
    grid = (mp // tile,)

    cost = pl.CostEstimate(
        flops=2 * mp * (din * hp + hp * hp + hp * np_),
        transcendentals=(mp * np_ if activation in ("softmax", "sigmoid") else 0),
        bytes_accessed=(mp * din * 4                      # x
                        + (din * hp + hp * hp + hp * np_) * 2  # bf16 weights
                        + (2 * hp + np_) * 4              # biases
                        + mp * np_ * 4),                  # output
    )

    kernel = functools.partial(_ann_fused_kernel, activation=activation,
                               bf16_relu=_bf16_elementwise())

    def call(single_buffer_weights):
        def w_spec(shape):
            idx = lambda i: (0, 0)
            if single_buffer_weights:
                # Grid-invariant operand: one VMEM buffer instead of the
                # default double buffer (DMA'd once anyway).
                return pl.BlockSpec(shape, idx, pipeline_mode=pl.Buffered(1))
            return pl.BlockSpec(shape, idx)

        return pl.pallas_call(
            kernel,
            out_shape=jax.ShapeDtypeStruct((mp, np_), jnp.float32),
            grid_spec=pltpu.PrefetchScalarGridSpec(
                num_scalar_prefetch=0,
                grid=grid,
                in_specs=[
                    pl.BlockSpec((tile, din), lambda i: (i, 0)),  # x tile (pipelined)
                    w_spec((din, hp)),                            # w1 (resident)
                    w_spec((1, hp)),                              # b1
                    w_spec((hp, hp)),                             # w2
                    w_spec((1, hp)),                              # b2
                    w_spec((hp, np_)),                            # w3
                    w_spec((1, np_)),                             # b3
                ],
                out_specs=pl.BlockSpec((tile, np_), lambda i: (i, 0)),
            ),
            compiler_params=pltpu.CompilerParams(
                dimension_semantics=("parallel",),   # megacore / v7x 2-TC sharding
                vmem_limit_bytes=_vmem_limit_bytes(),
            ),
            cost_estimate=cost,
        )(x, params["w1"], params["b1"], params["w2"], params["b2"],
          params["w3"], params["b3"])

    if _SINGLE_BUFFER_WEIGHTS_OK is None:
        try:
            out = jax.block_until_ready(call(True))
            _SINGLE_BUFFER_WEIGHTS_OK = True
        except Exception:
            # This JAX build rejects pipeline_mode=pl.Buffered(1); use the
            # previously-validated default (double-buffered) configuration.
            _SINGLE_BUFFER_WEIGHTS_OK = False
            out = call(False)
    else:
        out = call(_SINGLE_BUFFER_WEIGHTS_OK)

    return out[:M, :output_size]


# --------------------------- pure-JAX f32 reference ----------------------------

def _reference_forward(x, raw, problem, output_size):
    h = jnp.maximum(x @ raw["w1"].T + raw["b1"], 0.0)
    h = jnp.maximum(h @ raw["w2"].T + raw["b2"], 0.0)
    logits = h @ raw["w3"].T + raw["b3"]
    if problem == "classification" and output_size > 1:
        return jax.nn.softmax(logits, axis=1)
    if problem == "classification" and output_size == 1:
        return jax.nn.sigmoid(logits)
    return logits


# ------------------------------------ demo --------------------------------------

if __name__ == "__main__":
    input_size, hidden_size, output_size = 16, 32, 10
    problem = "classification"
    batch = 2

    key = jax.random.PRNGKey(0)
    k_x, k_p = jax.random.split(key)

    x = jax.random.normal(k_x, (batch, input_size), jnp.float32)
    raw = init_params(k_p, input_size, hidden_size, output_size)
    params, activation = prepare_params(raw, problem, output_size)

    out = ann_forward(x, params, activation, output_size)
    out = jax.block_until_ready(out)

    assert out.shape == (batch, output_size)
    # classification with output_size > 1 -> softmax rows sum to ~1
    # (approx-reciprocal epilogue + bf16 weights -> loose tolerance)
    assert bool(jnp.allclose(jnp.sum(out, axis=1), 1.0, atol=1e-2))
    ref = _reference_forward(x, raw, problem, output_size)
    assert bool(jnp.allclose(out, ref, atol=2e-2)), "mismatch vs f32 reference"
    print("KERNEL_OK")
</pallas_src>

<mosaic_0001>
module attributes {stable_mosaic.version = 11 : i64} {
  func.func @_ann_fused_kernel(%arg0: i32, %arg1: memref<8x16xf32, #tpu.memory_space<vmem>>, %arg2: memref<16x128xbf16, #tpu.memory_space<vmem>>, %arg3: memref<1x128xf32, #tpu.memory_space<vmem>>, %arg4: memref<128x128xbf16, #tpu.memory_space<vmem>>, %arg5: memref<1x128xf32, #tpu.memory_space<vmem>>, %arg6: memref<128x128xbf16, #tpu.memory_space<vmem>>, %arg7: memref<1x128xf32, #tpu.memory_space<vmem>>, %arg8: memref<8x128xf32, #tpu.memory_space<vmem>>) attributes {dimension_semantics = [#tpu.dimension_semantics<parallel>], iteration_bounds = array<i64: 1>, scalar_prefetch = 0 : i64, scratch_operands = 0 : i64, tpu.core_type = #tpu.core_type<tc>, window_params = [{transform_indices = @transform_0, window_bounds = array<i64: 8, 16>}, {pipeline_mode = #tpu.pipeline_mode<synchronous>, transform_indices = @transform_1, window_bounds = array<i64: 16, 128>}, {pipeline_mode = #tpu.pipeline_mode<synchronous>, transform_indices = @transform_2, window_bounds = array<i64: 1, 128>}, {pipeline_mode = #tpu.pipeline_mode<synchronous>, transform_indices = @transform_3, window_bounds = array<i64: 128, 128>}, {pipeline_mode = #tpu.pipeline_mode<synchronous>, transform_indices = @transform_4, window_bounds = array<i64: 1, 128>}, {pipeline_mode = #tpu.pipeline_mode<synchronous>, transform_indices = @transform_5, window_bounds = array<i64: 128, 128>}, {pipeline_mode = #tpu.pipeline_mode<synchronous>, transform_indices = @transform_6, window_bounds = array<i64: 1, 128>}, {transform_indices = @transform_7, window_bounds = array<i64: 8, 128>}]} {
    %c0 = arith.constant 0 : index
    %c0_0 = arith.constant 0 : index
    %0 = vector.load %arg1[%c0, %c0_0] : memref<8x16xf32, #tpu.memory_space<vmem>>, vector<8x16xf32>
    %1 = arith.truncf %0 : vector<8x16xf32> to vector<8x16xbf16>
    %c0_1 = arith.constant 0 : index
    %c0_2 = arith.constant 0 : index
    %2 = vector.load %arg2[%c0_1, %c0_2] : memref<16x128xbf16, #tpu.memory_space<vmem>>, vector<16x128xbf16>
    %cst = arith.constant dense<0.000000e+00> : vector<8x128xf32>
    %3 = tpu.matmul %1, %2, %cst {dimension_numbers = #tpu.dot_dimension_numbers<[1], [0], [0], [1], [0, 0, 1, 1], [], []>} : vector<8x16xbf16>, vector<16x128xbf16>, vector<8x128xf32> -> vector<8x128xf32>
    %c0_3 = arith.constant 0 : index
    %c0_4 = arith.constant 0 : index
    %4 = vector.load %arg3[%c0_3, %c0_4] : memref<1x128xf32, #tpu.memory_space<vmem>>, vector<1x128xf32>
    %5 = vector.broadcast %4 : vector<1x128xf32> to vector<8x128xf32>
    %6 = arith.addf %3, %5 : vector<8x128xf32>
    %cst_5 = arith.constant 0.000000e+00 : f32
    %7 = vector.broadcast %cst_5 : f32 to vector<8x128xf32>
    %8 = arith.maximumf %6, %7 : vector<8x128xf32>
    %9 = arith.truncf %8 : vector<8x128xf32> to vector<8x128xbf16>
    %c0_6 = arith.constant 0 : index
    %c0_7 = arith.constant 0 : index
    %10 = vector.load %arg4[%c0_6, %c0_7] : memref<128x128xbf16, #tpu.memory_space<vmem>>, vector<128x128xbf16>
    %cst_8 = arith.constant dense<0.000000e+00> : vector<8x128xf32>
    %11 = tpu.matmul %9, %10, %cst_8 {dimension_numbers = #tpu.dot_dimension_numbers<[1], [0], [0], [1], [0, 0, 1, 1], [], []>} : vector<8x128xbf16>, vector<128x128xbf16>, vector<8x128xf32> -> vector<8x128xf32>
    %c0_9 = arith.constant 0 : index
    %c0_10 = arith.constant 0 : index
    %12 = vector.load %arg5[%c0_9, %c0_10] : memref<1x128xf32, #tpu.memory_space<vmem>>, vector<1x128xf32>
    %13 = vector.broadcast %12 : vector<1x128xf32> to vector<8x128xf32>
    %14 = arith.addf %11, %13 : vector<8x128xf32>
    %cst_11 = arith.constant 0.000000e+00 : f32
    %15 = vector.broadcast %cst_11 : f32 to vector<8x128xf32>
    %16 = arith.maximumf %14, %15 : vector<8x128xf32>
    %17 = arith.truncf %16 : vector<8x128xf32> to vector<8x128xbf16>
    %c0_12 = arith.constant 0 : index
    %c0_13 = arith.constant 0 : index
    %18 = vector.load %arg6[%c0_12, %c0_13] : memref<128x128xbf16, #tpu.memory_space<vmem>>, vector<128x128xbf16>
    %cst_14 = arith.constant dense<0.000000e+00> : vector<8x128xf32>
    %19 = tpu.matmul %17, %18, %cst_14 {dimension_numbers = #tpu.dot_dimension_numbers<[1], [0], [0], [1], [0, 0, 1, 1], [], []>} : vector<8x128xbf16>, vector<128x128xbf16>, vector<8x128xf32> -> vector<8x128xf32>
    %c0_15 = arith.constant 0 : index
    %c0_16 = arith.constant 0 : index
    %20 = vector.load %arg7[%c0_15, %c0_16] : memref<1x128xf32, #tpu.memory_space<vmem>>, vector<1x128xf32>
    %21 = vector.broadcast %20 : vector<1x128xf32> to vector<8x128xf32>
    %22 = arith.addf %19, %21 : vector<8x128xf32>
    %cst_17 = arith.constant dense<0xFF800000> : vector<8xf32>
    %23 = vector.multi_reduction <maximumf>, %22, %cst_17 [1] : vector<8x128xf32> to vector<8xf32>
    %24 = vector.shape_cast %23 : vector<8xf32> to vector<8x1xf32>
    %25 = vector.broadcast %24 : vector<8x1xf32> to vector<8x128xf32>
    %26 = arith.subf %22, %25 : vector<8x128xf32>
    %27 = math.exp %26 : vector<8x128xf32>
    %cst_18 = arith.constant dense<0.000000e+00> : vector<8xf32>
    %28 = vector.multi_reduction <add>, %27, %cst_18 [1] : vector<8x128xf32> to vector<8xf32>
    %29 = vector.shape_cast %28 : vector<8xf32> to vector<8x1xf32>
    %30 = tpu.reciprocal %29 {approx = true} : vector<8x1xf32> -> vector<8x1xf32>
    %31 = vector.broadcast %30 : vector<8x1xf32> to vector<8x128xf32>
    %32 = arith.mulf %27, %31 : vector<8x128xf32>
    %c0_19 = arith.constant 0 : index
    %c0_20 = arith.constant 0 : index
    %33 = vector.load %arg8[%c0_19, %c0_20] : memref<8x128xf32, #tpu.memory_space<vmem>>, vector<8x128xf32>
    tpu.vector_store %arg8[%c0_19, %c0_20], %32 {strides = array<i32>} : memref<8x128xf32, #tpu.memory_space<vmem>>, vector<8x128xf32>,
    return
  }
  func.func @transform_0(%arg0: i32) -> (i32, i32) {
    %c0_i32 = arith.constant 0 : i32
    %c0_i32_0 = arith.constant 0 : i32
    return %arg0, %c0_i32 : i32, i32
  }
  func.func @transform_1(%arg0: i32) -> (i32, i32) {
    %c0_i32 = arith.constant 0 : i32
    %c0_i32_0 = arith.constant 0 : i32
    %c0_i32_1 = arith.constant 0 : i32
    return %c0_i32, %c0_i32_0 : i32, i32
  }
  func.func @transform_2(%arg0: i32) -> (i32, i32) {
    %c0_i32 = arith.constant 0 : i32
    %c0_i32_0 = arith.constant 0 : i32
    %c0_i32_1 = arith.constant 0 : i32
    return %c0_i32, %c0_i32_0 : i32, i32
  }
  func.func @transform_3(%arg0: i32) -> (i32, i32) {
    %c0_i32 = arith.constant 0 : i32
    %c0_i32_0 = arith.constant 0 : i32
    %c0_i32_1 = arith.constant 0 : i32
    return %c0_i32, %c0_i32_0 : i32, i32
  }
  func.func @transform_4(%arg0: i32) -> (i32, i32) {
    %c0_i32 = arith.constant 0 : i32
    %c0_i32_0 = arith.constant 0 : i32
    %c0_i32_1 = arith.constant 0 : i32
    return %c0_i32, %c0_i32_0 : i32, i32
  }
  func.func @transform_5(%arg0: i32) -> (i32, i32) {
    %c0_i32 = arith.constant 0 : i32
    %c0_i32_0 = arith.constant 0 : i32
    %c0_i32_1 = arith.constant 0 : i32
    return %c0_i32, %c0_i32_0 : i32, i32
  }
  func.func @transform_6(%arg0: i32) -> (i32, i32) {
    %c0_i32 = arith.constant 0 : i32
    %c0_i32_0 = arith.constant 0 : i32
    %c0_i32_1 = arith.constant 0 : i32
    return %c0_i32, %c0_i32_0 : i32, i32
  }
  func.func @transform_7(%arg0: i32) -> (i32, i32) {
    %c0_i32 = arith.constant 0 : i32
    %c0_i32_0 = arith.constant 0 : i32
    return %arg0, %c0_i32 : i32, i32
  }
}

module attributes {stable_mosaic.version = 11 : i64} {
  func.func @_ann_fused_kernel(%arg0: i32, %arg1: memref<8x16xf32, #tpu.memory_space<vmem>>, %arg2: memref<16x128xbf16, #tpu.memory_space<vmem>>, %arg3: memref<1x128xf32, #tpu.memory_space<vmem>>, %arg4: memref<128x128xbf16, #tpu.memory_space<vmem>>, %arg5: memref<1x128xf32, #tpu.memory_space<vmem>>, %arg6: memref<128x128xbf16, #tpu.memory_space<vmem>>, %arg7: memref<1x128xf32, #tpu.memory_space<vmem>>, %arg8: memref<8x128xf32, #tpu.memory_space<vmem>>) attributes {dimension_semantics = [#tpu.dimension_semantics<parallel>], iteration_bounds = array<i64: 1>, scalar_prefetch = 0 : i64, scratch_operands = 0 : i64, tpu.core_type = #tpu.core_type<tc>, window_params = [{transform_indices = @transform_0, window_bounds = array<i64: 8, 16>}, {pipeline_mode = #tpu.pipeline_mode<synchronous>, transform_indices = @transform_1, window_bounds = array<i64: 16, 128>}, {pipeline_mode = #tpu.pipeline_mode<synchronous>, transform_indices = @transform_2, window_bounds = array<i64: 1, 128>}, {pipeline_mode = #tpu.pipeline_mode<synchronous>, transform_indices = @transform_3, window_bounds = array<i64: 128, 128>}, {pipeline_mode = #tpu.pipeline_mode<synchronous>, transform_indices = @transform_4, window_bounds = array<i64: 1, 128>}, {pipeline_mode = #tpu.pipeline_mode<synchronous>, transform_indices = @transform_5, window_bounds = array<i64: 128, 128>}, {pipeline_mode = #tpu.pipeline_mode<synchronous>, transform_indices = @transform_6, window_bounds = array<i64: 1, 128>}, {transform_indices = @transform_7, window_bounds = array<i64: 8, 128>}]} {
    %c0 = arith.constant 0 : index
    %c0_0 = arith.constant 0 : index
    %0 = vector.load %arg1[%c0, %c0_0] : memref<8x16xf32, #tpu.memory_space<vmem>>, vector<8x16xf32>
    %1 = arith.truncf %0 : vector<8x16xf32> to vector<8x16xbf16>
    %c0_1 = arith.constant 0 : index
    %c0_2 = arith.constant 0 : index
    %2 = vector.load %arg2[%c0_1, %c0_2] : memref<16x128xbf16, #tpu.memory_space<vmem>>, vector<16x128xbf16>
    %cst = arith.constant dense<0.000000e+00> : vector<8x128xf32>
    %3 = tpu.matmul %1, %2, %cst {dimension_numbers = #tpu.dot_dimension_numbers<[1], [0], [0], [1], [0, 0, 1, 1], [], []>} : vector<8x16xbf16>, vector<16x128xbf16>, vector<8x128xf32> -> vector<8x128xf32>
    %c0_3 = arith.constant 0 : index
    %c0_4 = arith.constant 0 : index
    %4 = vector.load %arg3[%c0_3, %c0_4] : memref<1x128xf32, #tpu.memory_space<vmem>>, vector<1x128xf32>
    %5 = vector.broadcast %4 : vector<1x128xf32> to vector<8x128xf32>
    %6 = arith.addf %3, %5 : vector<8x128xf32>
    %cst_5 = arith.constant 0.000000e+00 : f32
    %7 = vector.broadcast %cst_5 : f32 to vector<8x128xf32>
    %8 = arith.maximumf %6, %7 : vector<8x128xf32>
    %9 = arith.truncf %8 : vector<8x128xf32> to vector<8x128xbf16>
    %c0_6 = arith.constant 0 : index
    %c0_7 = arith.constant 0 : index
    %10 = vector.load %arg4[%c0_6, %c0_7] : memref<128x128xbf16, #tpu.memory_space<vmem>>, vector<128x128xbf16>
    %cst_8 = arith.constant dense<0.000000e+00> : vector<8x128xf32>
    %11 = tpu.matmul %9, %10, %cst_8 {dimension_numbers = #tpu.dot_dimension_numbers<[1], [0], [0], [1], [0, 0, 1, 1], [], []>} : vector<8x128xbf16>, vector<128x128xbf16>, vector<8x128xf32> -> vector<8x128xf32>
    %c0_9 = arith.constant 0 : index
    %c0_10 = arith.constant 0 : index
    %12 = vector.load %arg5[%c0_9, %c0_10] : memref<1x128xf32, #tpu.memory_space<vmem>>, vector<1x128xf32>
    %13 = vector.broadcast %12 : vector<1x128xf32> to vector<8x128xf32>
    %14 = arith.addf %11, %13 : vector<8x128xf32>
    %cst_11 = arith.constant 0.000000e+00 : f32
    %15 = vector.broadcast %cst_11 : f32 to vector<8x128xf32>
    %16 = arith.maximumf %14, %15 : vector<8x128xf32>
    %17 = arith.truncf %16 : vector<8x128xf32> to vector<8x128xbf16>
    %c0_12 = arith.constant 0 : index
    %c0_13 = arith.constant 0 : index
    %18 = vector.load %arg6[%c0_12, %c0_13] : memref<128x128xbf16, #tpu.memory_space<vmem>>, vector<128x128xbf16>
    %cst_14 = arith.constant dense<0.000000e+00> : vector<8x128xf32>
    %19 = tpu.matmul %17, %18, %cst_14 {dimension_numbers = #tpu.dot_dimension_numbers<[1], [0], [0], [1], [0, 0, 1, 1], [], []>} : vector<8x128xbf16>, vector<128x128xbf16>, vector<8x128xf32> -> vector<8x128xf32>
    %c0_15 = arith.constant 0 : index
    %c0_16 = arith.constant 0 : index
    %20 = vector.load %arg7[%c0_15, %c0_16] : memref<1x128xf32, #tpu.memory_space<vmem>>, vector<1x128xf32>
    %21 = vector.broadcast %20 : vector<1x128xf32> to vector<8x128xf32>
    %22 = arith.addf %19, %21 : vector<8x128xf32>
    %cst_17 = arith.constant dense<0xFF800000> : vector<8xf32>
    %23 = vector.multi_reduction <maximumf>, %22, %cst_17 [1] : vector<8x128xf32> to vector<8xf32>
    %24 = vector.shape_cast %23 : vector<8xf32> to vector<8x1xf32>
    %25 = vector.broadcast %24 : vector<8x1xf32> to vector<8x128xf32>
    %26 = arith.subf %22, %25 : vector<8x128xf32>
    %27 = math.exp %26 : vector<8x128xf32>
    %cst_18 = arith.constant dense<0.000000e+00> : vector<8xf32>
    %28 = vector.multi_reduction <add>, %27, %cst_18 [1] : vector<8x128xf32> to vector<8xf32>
    %29 = vector.shape_cast %28 : vector<8xf32> to vector<8x1xf32>
    %30 = tpu.reciprocal %29 {approx = true} : vector<8x1xf32> -> vector<8x1xf32>
    %31 = vector.broadcast %30 : vector<8x1xf32> to vector<8x128xf32>
    %32 = arith.mulf %27, %31 : vector<8x128xf32>
    %c0_19 = arith.constant 0 : index
    %c0_20 = arith.constant 0 : index
    %33 = vector.load %arg8[%c0_19, %c0_20] : memref<8x128xf32, #tpu.memory_space<vmem>>, vector<8x128xf32>
    tpu.vector_store %arg8[%c0_19, %c0_20], %32 {strides = array<i32>} : memref<8x128xf32, #tpu.memory_space<vmem>>, vector<8x128xf32>,
    return
  }
  func.func @transform_0(%arg0: i32) -> (i32, i32) {
    %c0_i32 = arith.constant 0 : i32
    %c0_i32_0 = arith.constant 0 : i32
    return %arg0, %c0_i32 : i32, i32
  }
  func.func @transform_1(%arg0: i32) -> (i32, i32) {
    %c0_i32 = arith.constant 0 : i32
    %c0_i32_0 = arith.constant 0 : i32
    %c0_i32_1 = arith.constant 0 : i32
    return %c0_i32, %c0_i32_0 : i32, i32
  }
  func.func @transform_2(%arg0: i32) -> (i32, i32) {
    %c0_i32 = arith.constant 0 : i32
    %c0_i32_0 = arith.constant 0 : i32
    %c0_i32_1 = arith.constant 0 : i32
    return %c0_i32, %c0_i32_0 : i32, i32
  }
  func.func @transform_3(%arg0: i32) -> (i32, i32) {
    %c0_i32 = arith.constant 0 : i32
    %c0_i32_0 = arith.constant 0 : i32
    %c0_i32_1 = arith.constant 0 : i32
    return %c0_i32, %c0_i32_0 : i32, i32
  }
  func.func @transform_4(%arg0: i32) -> (i32, i32) {
    %c0_i32 = arith.constant 0 : i32
    %c0_i32_0 = arith.constant 0 : i32
    %c0_i32_1 = arith.constant 0 : i32
    return %c0_i32, %c0_i32_0 : i32, i32
  }
  func.func @transform_5(%arg0: i32) -> (i32, i32) {
    %c0_i32 = arith.constant 0 : i32
    %c0_i32_0 = arith.constant 0 : i32
    %c0_i32_1 = arith.constant 0 : i32
    return %c0_i32, %c0_i32_0 : i32, i32
  }
  func.func @transform_6(%arg0: i32) -> (i32, i32) {
    %c0_i32 = arith.constant 0 : i32
    %c0_i32_0 = arith.constant 0 : i32
    %c0_i32_1 = arith.constant 0 : i32
    return %c0_i32, %c0_i32_0 : i32, i32
  }
  func.func @transform_7(%arg0: i32) -> (i32, i32) {
    %c0_i32 = arith.constant 0 : i32
    %c0_i32_0 = arith.constant 0 : i32
    return %arg0, %c0_i32 : i32, i32
  }
}

</mosaic_0001>

<bundles_post_ra>
// kernel: tpu_custom_call.1
= control target key start
LH: loop header
LB: loop body
LE: loop exit
PB: predicated region body
PF: predicated region fallthrough
CT: control target
= control target key end

     0   :  { %12 = vsyncpa [#allocation3], 0  ;;  %s777_s0 = inlined_call_operand.hbm [shape: f32[8,16], index: 0, kind: input, shape index: {}]   ;;  %s778_s1 = inlined_call_operand.hbm [shape: bf16[16,128], index: 1, kind: input, shape index: {}]   ;;  %s779_s2 = inlined_call_operand.vmem [shape: f32[1,128], index: 2, kind: input, shape index: {}]   ;;  %s780_s3 = inlined_call_operand.hbm [shape: bf16[128,128], index: 3, kind: input, shape index: {}]   ;;  %s781_s4 = inlined_call_operand.vmem [shape: f32[1,128], index: 4, kind: input, shape index: {}]   ;;  %s782_s5 = inlined_call_operand.hbm [shape: bf16[128,128], index: 5, kind: input, shape index: {}]   ;;  %s783_s6 = inlined_call_operand.vmem [shape: f32[1,128], index: 6, kind: input, shape index: {}]   ;;  %s784_s7 = inlined_call_operand.hbm [shape: f32[8,128], index: 7, kind: output, shape index: {}]  }
   0x1   :  { %13 = vsyncpa [#allocation6], 0 }
   0x2   :  { %14 = vsyncpa [#allocation9], 0 }
   0x3   :  { %15 = vsyncpa [#allocation4], 0  ;;  %s630_s24 = smov [#allocation5]   ;;  %s512_s28 = scalar_lea.hbm %s778_s1, 128 }
   0x4   :  { %s31_s25 = sshll.u32 %s630_s24, 4  ;;  %p513_p0 = scmp.ne.s32.totalorder %s778_s1, %s512_s28  ;;  %s32_s25 = int_to_ptr.vmem [resolvable:$true] %s31_s25 }
   0x5   :  { %p516_p1 = scmp.lt.u32.totalorder %s512_s28, %s778_s1 }
   0x7   :  { %p518_p2 = pnand %p516_p1, %p513_p0 }
   0x9   :  { %521 = shalt.err (!%p518_p2)
}
   0xa   :  { %s522_s10 = scalar_lea.vmem %s32_s25, 128  ;;  %p527_p4 = scmp.lt.s32.totalorder %s32_s25, %s32_s25 }
   0xb   :  { %p523_p3 = scmp.ne.s32.totalorder %s32_s25, %s522_s10  ;;  %p528_p5 = scmp.lt.s32.totalorder %s522_s10, %s522_s10 }
   0xd   :  { %p529_p6 = por %p528_p5, %p527_p4 }
   0xf   :  { %p530_p7 = pnand %p529_p6, %p523_p3 }
  0x11   :  { %533 = shalt.err (!%p530_p7)
}
  0x12   :  { %s631_s11 = smov 64   ;;  %s632_s12 = smov 4  }
  0x13   :  { %37 = dma.hbm_to_vmem [thread:$0]  %s778_s1, 128, %s32_s25, [#allocation6], %s631_s11, %s631_s11, %s632_s12  }
  0x14   :  { %s633_s15 = smov [#allocation2]   ;;  %s634_s17 = smov [#allocation7]  }
  0x15   :  { %s22_s16 = sshll.u32 %s633_s15, 4  ;;  %s45_s18 = sshll.u32 %s634_s17, 4  ;;  %s23_s16 = int_to_ptr.vmem [resolvable:$true] %s22_s16  ;;  %s46_s18 = int_to_ptr.vmem [resolvable:$true] %s45_s18 }
  0x16   :  { %s534_s21 = scalar_lea.hbm %s777_s0, 128 }
  0x17   :  { %p535_p8 = scmp.ne.s32.totalorder %s777_s0, %s534_s21  ;;  %p538_p9 = scmp.lt.u32.totalorder %s534_s21, %s777_s0 }
  0x19   :  { %p540_p10 = pnand %p538_p9, %p535_p8 }
  0x1b   :  { %543 = shalt.err (!%p540_p10)
}
  0x1c   :  { %s544_s1 = scalar_lea.vmem %s23_s16, 128  ;;  %p549_p12 = scmp.lt.s32.totalorder %s23_s16, %s23_s16 }
  0x1d   :  { %p545_p11 = scmp.ne.s32.totalorder %s23_s16, %s544_s1  ;;  %p550_p13 = scmp.lt.s32.totalorder %s544_s1, %s544_s1 }
  0x1f   :  { %p551_p0 = por %p550_p13, %p549_p12 }
  0x21   :  { %p552_p1 = pnand %p551_p0, %p545_p11 }
  0x23   :  { %555 = shalt.err (!%p552_p1)
}
  0x24   :  { %25 = dma.hbm_to_vmem [thread:$0]  %s777_s0, 128, %s23_s16, [#allocation3]  }
  0x25   :  { %s556_s30 = scalar_lea.hbm %s780_s3, 1024 }
  0x26   :  { %p557_p2 = scmp.ne.s32.totalorder %s780_s3, %s556_s30  ;;  %p560_p3 = scmp.lt.u32.totalorder %s556_s30, %s780_s3 }
  0x28   :  { %p562_p4 = pnand %p560_p3, %p557_p2 }
  0x2a   :  { %565 = shalt.err (!%p562_p4)
}
  0x2b   :  { %s566_s14 = scalar_lea.vmem %s46_s18, 1024  ;;  %p571_p6 = scmp.lt.s32.totalorder %s46_s18, %s46_s18 }
  0x2c   :  { %p567_p5 = scmp.ne.s32.totalorder %s46_s18, %s566_s14  ;;  %p572_p7 = scmp.lt.s32.totalorder %s566_s14, %s566_s14 }
  0x2e   :  { %p573_p8 = por %p572_p7, %p571_p6 }
  0x30   :  { %p574_p9 = pnand %p573_p8, %p567_p5 }
  0x32   :  { %577 = shalt.err (!%p574_p9)
}
  0x33   :  { %51 = dma.hbm_to_vmem [thread:$0]  %s780_s3, 1024, %s46_s18, [#allocation6], %s631_s11, %s631_s11, %s632_s12  }
  0x34   :  { %s635_s16 = smov [#allocation8]   ;;  %s578_s21 = scalar_lea.hbm %s782_s5, 1024 }
  0x35   :  { %s59_s17 = sshll.u32 %s635_s16, 4  ;;  %p579_p10 = scmp.ne.s32.totalorder %s782_s5, %s578_s21  ;;  %s60_s17 = int_to_ptr.vmem [resolvable:$true] %s59_s17 }
  0x36   :  { %p582_p11 = scmp.lt.u32.totalorder %s578_s21, %s782_s5 }
  0x38   :  { %p584_p12 = pnand %p582_p11, %p579_p10 }
  0x3a   :  { %587 = shalt.err (!%p584_p12)
}
  0x3b   :  { %s588_s1 = scalar_lea.vmem %s60_s17, 1024  ;;  %p593_p0 = scmp.lt.s32.totalorder %s60_s17, %s60_s17 }
  0x3c   :  { %p589_p13 = scmp.ne.s32.totalorder %s60_s17, %s588_s1  ;;  %p594_p1 = scmp.lt.s32.totalorder %s588_s1, %s588_s1 }
  0x3e   :  { %p595_p2 = por %p594_p1, %p593_p0 }
  0x40   :  { %p596_p3 = pnand %p595_p2, %p589_p13 }
  0x42   :  { %599 = shalt.err (!%p596_p3)
}
  0x43   :  { %65 = dma.hbm_to_vmem [thread:$0]  %s782_s5, 1024, %s60_s17, [#allocation9], %s631_s11, %s631_s11, %s632_s12  }
  0x44   :  { %622 = dma.done.wait [#allocation3], 128  }
  0x45   :  { %623 = vsyncadd [#allocation3], 4294967168 }
  0x46   :  { %624 = dma.done.wait [#allocation6], 1152  }
  0x47   :  { %625 = vsyncadd [#allocation6], 4294966144 }
  0x48   :  { %626 = dma.done.wait [#allocation9], 1024  }
  0x49   :  { %627 = vsyncadd [#allocation9], 4294966272  ;;  %v636_v0 = vmov 0.0   ;;  %vm637_vm0 = vmmov 0   ;;  %v491_v1 = vld [vmem:[#allocation5] sm:$0xff]   ;;  %v81_v2 = vld [vmem:[#allocation2] sm:$0xff] }
  0x4a   :  { %436 = vmatprep.subr.bf16.mxu0 %v636_v0  ;;  %438 = vmatprep.mubr.msk.bf16.mxu0 %vm637_vm0, %v636_v0  ;;  %v82_v3 = vpack.c.bf16 %v81_v2, %v81_v2  ;;  %vm98_vm1 = vcmask 130048   ;;  %v492_v4 = vld [vmem:[#allocation7] sm:$0xff]   ;;  %v493_v5 = vld [vmem:[#allocation7 + $0x8] sm:$0xff]   ;;  %v494_v6 = vld [vmem:[#allocation7 + $0x10] sm:$0xff]  }
  0x4b   :  { %442 = vmatprep.subr.bf16.mxu1 %v636_v0  ;;  %458 = vmatprep.mubr.msk.bf16.mxu1 %vm637_vm0, %v636_v0  ;;  %v495_v7 = vld [vmem:[#allocation7 + $0x18] sm:$0xff]   ;;  %v496_v8 = vld [vmem:[#allocation7 + $0x20] sm:$0xff]   ;;  %v497_v9 = vld [vmem:[#allocation7 + $0x28] sm:$0xff]  }
  0x4c   :  { %437 = vmatpush3.bf16.msra.mxu0 %v491_v1  ;;  %443 = vmatpush3.bf16.msra.mxu1 %v492_v4  ;;  %v498_v10 = vld [vmem:[#allocation7 + $0x30] sm:$0xff]   ;;  %v499_v11 = vld [vmem:[#allocation7 + $0x38] sm:$0xff]   ;;  %v500_v12 = vld [vmem:[#allocation8] sm:$0xff]  }
  0x4d   :  { %462 = vmatprep.subr.bf16.mxu0 %v636_v0  ;;  %444 = vmatprep.subr.bf16.mxu1 %v636_v0  ;;  %v501_v13 = vld [vmem:[#allocation8 + $0x8] sm:$0xff]   ;;  %v502_v14 = vld [vmem:[#allocation8 + $0x10] sm:$0xff]   ;;  %v503_v15 = vld [vmem:[#allocation8 + $0x18] sm:$0xff]  }
  0x4e   :  { %v504_v16 = vld [vmem:[#allocation8 + $0x20] sm:$0xff]   ;;  %v505_v17 = vld [vmem:[#allocation8 + $0x28] sm:$0xff]   ;;  %v395_v18 = vld [vmem:[%s779_s2] ss:$0 sm:$0xff] }
  0x4f   :  { %439 = vmatmul.mubr.msk.bf16.vlgmr.msra.gmra.mrb[0].mxu0 %vm98_vm1, %v82_v3  ;;  %v506_v26 = vld [vmem:[#allocation8 + $0x30] sm:$0xff]   ;;  %v507_v27 = vld [vmem:[#allocation8 + $0x38] sm:$0xff]  }
  0x50   :  { %478 = vmatprep.mubr.msk.bf16.mxu0 %vm637_vm0, %v636_v0  ;;  %445 = vmatpush3.bf16.msra.mxu1 %v493_v5  ;;  %v398_v28 = vld [vmem:[%s781_s4] ss:$0 sm:$0xff]  ;;  %s638_s4 = smov [#allocation10]  }
  0x51   :  { %446 = vmatprep.subr.bf16.mxu1 %v636_v0  ;;  %463 = vmatpush3.bf16.msra.mxu0 %v500_v12  ;;  %v407_v36 = vld [vmem:[%s783_s6] ss:$0 sm:$0xff]  ;;  %s384_s28 = sshll.u32 %s638_s4, 4  ;;  %s385_s28 = int_to_ptr.vmem [resolvable:$true] %s384_s28 }
  0x52   :  { %464 = vmatprep.subr.bf16.mxu0 %v636_v0  ;;  %s600_s6 = scalar_lea.vmem %s385_s28, 128  ;;  %p605_p5 = scmp.lt.s32.totalorder %s385_s28, %s385_s28 }
  0x53   :  { %p601_p4 = scmp.ne.s32.totalorder %s385_s28, %s600_s6  ;;  %p606_p6 = scmp.lt.s32.totalorder %s600_s6, %s600_s6 }
  0x54   :  { %447 = vmatpush3.bf16.msra.mxu1 %v494_v6 }
  0x55   :  { %448 = vmatprep.subr.bf16.mxu1 %v636_v0  ;;  %465 = vmatpush3.bf16.msra.mxu0 %v501_v13  ;;  %p607_p7 = por %p606_p6, %p605_p5 }
  0x56   :  { %466 = vmatprep.subr.bf16.mxu0 %v636_v0 }
  0x57   :  { %p608_p8 = pnand %p607_p7, %p601_p4 }
  0x58   :  { %449 = vmatpush3.bf16.msra.mxu1 %v495_v7 }
  0x59   :  { %450 = vmatprep.subr.bf16.mxu1 %v636_v0  ;;  %467 = vmatpush3.bf16.msra.mxu0 %v502_v14 }
  0x5a   :  { %468 = vmatprep.subr.bf16.mxu0 %v636_v0 }
  0x5c   :  { %451 = vmatpush3.bf16.msra.mxu1 %v496_v8 }
  0x5d   :  { %452 = vmatprep.subr.bf16.mxu1 %v636_v0  ;;  %469 = vmatpush3.bf16.msra.mxu0 %v503_v15 }
  0x5e   :  { %470 = vmatprep.subr.bf16.mxu0 %v636_v0 }
  0x60   :  { %453 = vmatpush3.bf16.msra.mxu1 %v497_v9 }
  0x61   :  { %454 = vmatprep.subr.bf16.mxu1 %v636_v0  ;;  %471 = vmatpush3.bf16.msra.mxu0 %v504_v16 }
  0x62   :  { %472 = vmatprep.subr.bf16.mxu0 %v636_v0 }
  0x64   :  { %455 = vmatpush3.bf16.msra.mxu1 %v498_v10 }
  0x65   :  { %456 = vmatprep.subr.bf16.mxu1 %v636_v0  ;;  %473 = vmatpush3.bf16.msra.mxu0 %v505_v17 }
  0x66   :  { %474 = vmatprep.subr.bf16.mxu0 %v636_v0 }
  0x68   :  { %457 = vmatpush3.bf16.msra.mxu1 %v499_v11 }
  0x69   :  { %475 = vmatpush3.bf16.msra.mxu0 %v506_v26 }
  0x6a   :  { %476 = vmatprep.subr.bf16.mxu0 %v636_v0 }
  0x6d   :  { %477 = vmatpush3.bf16.msra.mxu0 %v507_v27 }
 0x122   :  { %v136_v19 = vpop.f32.mrb[0].mxu0 }
 0x123   :  { %v137_v20 = vadd.f32 %v395_v18, %v136_v19  ;;  %v440_v21 = vpop.f32.mrb[1].mxu0 }
 0x124   :  { %v139_v22 = vpop.f32.mrb[2].mxu0 }
 0x125   :  { %v142_v23 = vmax.f32 %v137_v20, 0.0  ;;  %v441_v24 = vpop.f32.mrb[3].mxu0 }
 0x127   :  { %v143_v25 = vpack.c.bf16 %v142_v23, %v142_v23 }
 0x129   :  { %459 = vmatmul.mubr.bf16.vlgmr.msra.gmra.mrb[0].mxu1 %v143_v25 }
 0x1fc   :  { %v249_v29 = vpop.f32.mrb[0].mxu1 }
 0x1fd   :  { %v250_v30 = vadd.f32 %v398_v28, %v249_v29  ;;  %v460_v31 = vpop.f32.mrb[1].mxu1 }
 0x1fe   :  { %v252_v32 = vpop.f32.mrb[2].mxu1 }
 0x1ff   :  { %v255_v33 = vmax.f32 %v250_v30, 0.0  ;;  %v461_v34 = vpop.f32.mrb[3].mxu1 }
 0x201   :  { %v256_v35 = vpack.c.bf16 %v255_v33, %v255_v33 }
 0x203   :  { %479 = vmatmul.mubr.bf16.vlgmr.msra.gmra.mrb[4].mxu0 %v256_v35 }
 0x2d6   :  { %v362_v37 = vpop.f32.mrb[4].mxu0 }
 0x2d7   :  { %v363_v38 = vadd.f32 %v407_v36, %v362_v37  ;;  %v480_v39 = vpop.f32.mrb[5].mxu0 }
 0x2d8   :  { %v365_v40 = vpop.f32.mrb[6].mxu0 }
 0x2d9   :  { %368 = vmax.xlane.f32.xlu0 %v363_v38  ;;  %v481_v41 = vpop.f32.mrb[7].mxu0 }
 0x366   :  { %v369_v42 = vpop.xlane.xlu0 %368 }
 0x367   :  { %v370_v43 = vsub.f32 %v363_v38, %v369_v42 }
 0x369   :  { %v371_v44 = vmul.f32 1.442695, %v370_v43 }
 0x36b   :  { %508 = vpow2.f32 %v371_v44 }
 0x375   :  { %v509_v45 = vpop.eup %508 }
 0x376   :  { %373 = vadd.xlane.f32.xlu0 %v509_v45 }
 0x403   :  { %v374_v46 = vpop.xlane.xlu0 %373 }
 0x404   :  { %510 = vrcp.f32 %v374_v46 }
 0x40e   :  { %v511_v47 = vpop.eup %510 }
 0x40f   :  { %v376_v48 = vmul.f32 %v511_v47, %v509_v45 }
 0x411   :  { %377 = vst [vmem:[#allocation10] sm:$0xff] %v376_v48 }
 0x412   :  { %611 = shalt.err (!%p608_p8)
}
 0x413   :  { %s612_s8 = scalar_lea.hbm %s784_s7, 128 }
 0x414   :  { %p613_p9 = scmp.ne.s32.totalorder %s784_s7, %s612_s8  ;;  %p616_p10 = scmp.lt.u32.totalorder %s612_s8, %s784_s7 }
 0x416   :  { %p618_p11 = pnand %p616_p10, %p613_p9 }
 0x418   :  { %621 = shalt.err (!%p618_p11)
}
 0x419   :  { %387 = dma.vmem_to_hbm [thread:$0]  %s385_s28, 128, %s784_s7, [#allocation4]  }
 0x41a   :  { %628 = dma.done.wait [#allocation4], 128  }
 0x41b   :  { %629 = vsyncadd [#allocation4], 4294967168 }
 0x41c   :  { %391 = vsyncpa [#allocation3], 1 }
 0x41d   :  { %392 = vsyncpa [#allocation6], 1 }
 0x41e   :  { %393 = vsyncpa [#allocation9], 1 }
 0x41f   :  { %394 = vsyncpa [#allocation4], 1 }

// kernel: tpu_custom_call.1
= control target key start
LH: loop header
LB: loop body
LE: loop exit
PB: predicated region body
PF: predicated region fallthrough
CT: control target
= control target key end

     0   :  { %12 = vsyncpa [#allocation3], 0  ;;  %s777_s0 = inlined_call_operand.hbm [shape: f32[8,16], index: 0, kind: input, shape index: {}]   ;;  %s778_s1 = inlined_call_operand.hbm [shape: bf16[16,128], index: 1, kind: input, shape index: {}]   ;;  %s779_s2 = inlined_call_operand.vmem [shape: f32[1,128], index: 2, kind: input, shape index: {}]   ;;  %s780_s3 = inlined_call_operand.hbm [shape: bf16[128,128], index: 3, kind: input, shape index: {}]   ;;  %s781_s4 = inlined_call_operand.vmem [shape: f32[1,128], index: 4, kind: input, shape index: {}]   ;;  %s782_s5 = inlined_call_operand.hbm [shape: bf16[128,128], index: 5, kind: input, shape index: {}]   ;;  %s783_s6 = inlined_call_operand.vmem [shape: f32[1,128], index: 6, kind: input, shape index: {}]   ;;  %s784_s7 = inlined_call_operand.hbm [shape: f32[8,128], index: 7, kind: output, shape index: {}]  }
   0x1   :  { %13 = vsyncpa [#allocation6], 0 }
   0x2   :  { %14 = vsyncpa [#allocation9], 0 }
   0x3   :  { %15 = vsyncpa [#allocation4], 0  ;;  %s630_s24 = smov [#allocation5]   ;;  %s512_s28 = scalar_lea.hbm %s778_s1, 128 }
   0x4   :  { %s31_s25 = sshll.u32 %s630_s24, 4  ;;  %p513_p0 = scmp.ne.s32.totalorder %s778_s1, %s512_s28  ;;  %s32_s25 = int_to_ptr.vmem [resolvable:$true] %s31_s25 }
   0x5   :  { %p516_p1 = scmp.lt.u32.totalorder %s512_s28, %s778_s1 }
   0x7   :  { %p518_p2 = pnand %p516_p1, %p513_p0 }
   0x9   :  { %521 = shalt.err (!%p518_p2)
}
   0xa   :  { %s522_s10 = scalar_lea.vmem %s32_s25, 128  ;;  %p527_p4 = scmp.lt.s32.totalorder %s32_s25, %s32_s25 }
   0xb   :  { %p523_p3 = scmp.ne.s32.totalorder %s32_s25, %s522_s10  ;;  %p528_p5 = scmp.lt.s32.totalorder %s522_s10, %s522_s10 }
   0xd   :  { %p529_p6 = por %p528_p5, %p527_p4 }
   0xf   :  { %p530_p7 = pnand %p529_p6, %p523_p3 }
  0x11   :  { %533 = shalt.err (!%p530_p7)
}
  0x12   :  { %s631_s11 = smov 64   ;;  %s632_s12 = smov 4  }
  0x13   :  { %37 = dma.hbm_to_vmem [thread:$0]  %s778_s1, 128, %s32_s25, [#allocation6], %s631_s11, %s631_s11, %s632_s12  }
  0x14   :  { %s633_s15 = smov [#allocation2]   ;;  %s634_s17 = smov [#allocation7]  }
  0x15   :  { %s22_s16 = sshll.u32 %s633_s15, 4  ;;  %s45_s18 = sshll.u32 %s634_s17, 4  ;;  %s23_s16 = int_to_ptr.vmem [resolvable:$true] %s22_s16  ;;  %s46_s18 = int_to_ptr.vmem [resolvable:$true] %s45_s18 }
  0x16   :  { %s534_s21 = scalar_lea.hbm %s777_s0, 128 }
  0x17   :  { %p535_p8 = scmp.ne.s32.totalorder %s777_s0, %s534_s21  ;;  %p538_p9 = scmp.lt.u32.totalorder %s534_s21, %s777_s0 }
  0x19   :  { %p540_p10 = pnand %p538_p9, %p535_p8 }
  0x1b   :  { %543 = shalt.err (!%p540_p10)
}
  0x1c   :  { %s544_s1 = scalar_lea.vmem %s23_s16, 128  ;;  %p549_p12 = scmp.lt.s32.totalorder %s23_s16, %s23_s16 }
  0x1d   :  { %p545_p11 = scmp.ne.s32.totalorder %s23_s16, %s544_s1  ;;  %p550_p13 = scmp.lt.s32.totalorder %s544_s1, %s544_s1 }
  0x1f   :  { %p551_p0 = por %p550_p13, %p549_p12 }
  0x21   :  { %p552_p1 = pnand %p551_p0, %p545_p11 }
  0x23   :  { %555 = shalt.err (!%p552_p1)
}
  0x24   :  { %25 = dma.hbm_to_vmem [thread:$0]  %s777_s0, 128, %s23_s16, [#allocation3]  }
  0x25   :  { %s556_s30 = scalar_lea.hbm %s780_s3, 1024 }
  0x26   :  { %p557_p2 = scmp.ne.s32.totalorder %s780_s3, %s556_s30  ;;  %p560_p3 = scmp.lt.u32.totalorder %s556_s30, %s780_s3 }
  0x28   :  { %p562_p4 = pnand %p560_p3, %p557_p2 }
  0x2a   :  { %565 = shalt.err (!%p562_p4)
}
  0x2b   :  { %s566_s14 = scalar_lea.vmem %s46_s18, 1024  ;;  %p571_p6 = scmp.lt.s32.totalorder %s46_s18, %s46_s18 }
  0x2c   :  { %p567_p5 = scmp.ne.s32.totalorder %s46_s18, %s566_s14  ;;  %p572_p7 = scmp.lt.s32.totalorder %s566_s14, %s566_s14 }
  0x2e   :  { %p573_p8 = por %p572_p7, %p571_p6 }
  0x30   :  { %p574_p9 = pnand %p573_p8, %p567_p5 }
  0x32   :  { %577 = shalt.err (!%p574_p9)
}
  0x33   :  { %51 = dma.hbm_to_vmem [thread:$0]  %s780_s3, 1024, %s46_s18, [#allocation6], %s631_s11, %s631_s11, %s632_s12  }
  0x34   :  { %s635_s16 = smov [#allocation8]   ;;  %s578_s21 = scalar_lea.hbm %s782_s5, 1024 }
  0x35   :  { %s59_s17 = sshll.u32 %s635_s16, 4  ;;  %p579_p10 = scmp.ne.s32.totalorder %s782_s5, %s578_s21  ;;  %s60_s17 = int_to_ptr.vmem [resolvable:$true] %s59_s17 }
  0x36   :  { %p582_p11 = scmp.lt.u32.totalorder %s578_s21, %s782_s5 }
  0x38   :  { %p584_p12 = pnand %p582_p11, %p579_p10 }
  0x3a   :  { %587 = shalt.err (!%p584_p12)
}
  0x3b   :  { %s588_s1 = scalar_lea.vmem %s60_s17, 1024  ;;  %p593_p0 = scmp.lt.s32.totalorder %s60_s17, %s60_s17 }
  0x3c   :  { %p589_p13 = scmp.ne.s32.totalorder %s60_s17, %s588_s1  ;;  %p594_p1 = scmp.lt.s32.totalorder %s588_s1, %s588_s1 }
  0x3e   :  { %p595_p2 = por %p594_p1, %p593_p0 }
  0x40   :  { %p596_p3 = pnand %p595_p2, %p589_p13 }
  0x42   :  { %599 = shalt.err (!%p596_p3)
}
  0x43   :  { %65 = dma.hbm_to_vmem [thread:$0]  %s782_s5, 1024, %s60_s17, [#allocation9], %s631_s11, %s631_s11, %s632_s12  }
  0x44   :  { %622 = dma.done.wait [#allocation3], 128  }
  0x45   :  { %623 = vsyncadd [#allocation3], 4294967168 }
  0x46   :  { %624 = dma.done.wait [#allocation6], 1152  }
  0x47   :  { %625 = vsyncadd [#allocation6], 4294966144 }
  0x48   :  { %626 = dma.done.wait [#allocation9], 1024  }
  0x49   :  { %627 = vsyncadd [#allocation9], 4294966272  ;;  %v636_v0 = vmov 0.0   ;;  %vm637_vm0 = vmmov 0   ;;  %v491_v1 = vld [vmem:[#allocation5] sm:$0xff]   ;;  %v81_v2 = vld [vmem:[#allocation2] sm:$0xff] }
  0x4a   :  { %436 = vmatprep.subr.bf16.mxu0 %v636_v0  ;;  %438 = vmatprep.mubr.msk.bf16.mxu0 %vm637_vm0, %v636_v0  ;;  %v82_v3 = vpack.c.bf16 %v81_v2, %v81_v2  ;;  %vm98_vm1 = vcmask 130048   ;;  %v492_v4 = vld [vmem:[#allocation7] sm:$0xff]   ;;  %v493_v5 = vld [vmem:[#allocation7 + $0x8] sm:$0xff]   ;;  %v494_v6 = vld [vmem:[#allocation7 + $0x10] sm:$0xff]  }
  0x4b   :  { %442 = vmatprep.subr.bf16.mxu1 %v636_v0  ;;  %458 = vmatprep.mubr.msk.bf16.mxu1 %vm637_vm0, %v636_v0  ;;  %v495_v7 = vld [vmem:[#allocation7 + $0x18] sm:$0xff]   ;;  %v496_v8 = vld [vmem:[#allocation7 + $0x20] sm:$0xff]   ;;  %v497_v9 = vld [vmem:[#allocation7 + $0x28] sm:$0xff]  }
  0x4c   :  { %437 = vmatpush3.bf16.msra.mxu0 %v491_v1  ;;  %443 = vmatpush3.bf16.msra.mxu1 %v492_v4  ;;  %v498_v10 = vld [vmem:[#allocation7 + $0x30] sm:$0xff]   ;;  %v499_v11 = vld [vmem:[#allocation7 + $0x38] sm:$0xff]   ;;  %v500_v12 = vld [vmem:[#allocation8] sm:$0xff]  }
  0x4d   :  { %462 = vmatprep.subr.bf16.mxu0 %v636_v0  ;;  %444 = vmatprep.subr.bf16.mxu1 %v636_v0  ;;  %v501_v13 = vld [vmem:[#allocation8 + $0x8] sm:$0xff]   ;;  %v502_v14 = vld [vmem:[#allocation8 + $0x10] sm:$0xff]   ;;  %v503_v15 = vld [vmem:[#allocation8 + $0x18] sm:$0xff]  }
  0x4e   :  { %v504_v16 = vld [vmem:[#allocation8 + $0x20] sm:$0xff]   ;;  %v505_v17 = vld [vmem:[#allocation8 + $0x28] sm:$0xff]   ;;  %v395_v18 = vld [vmem:[%s779_s2] ss:$0 sm:$0xff] }
  0x4f   :  { %439 = vmatmul.mubr.msk.bf16.vlgmr.msra.gmra.mrb[0].mxu0 %vm98_vm1, %v82_v3  ;;  %v506_v26 = vld [vmem:[#allocation8 + $0x30] sm:$0xff]   ;;  %v507_v27 = vld [vmem:[#allocation8 + $0x38] sm:$0xff]  }
  0x50   :  { %478 = vmatprep.mubr.msk.bf16.mxu0 %vm637_vm0, %v636_v0  ;;  %445 = vmatpush3.bf16.msra.mxu1 %v493_v5  ;;  %v398_v28 = vld [vmem:[%s781_s4] ss:$0 sm:$0xff]  ;;  %s638_s4 = smov [#allocation10]  }
  0x51   :  { %446 = vmatprep.subr.bf16.mxu1 %v636_v0  ;;  %463 = vmatpush3.bf16.msra.mxu0 %v500_v12  ;;  %v407_v36 = vld [vmem:[%s783_s6] ss:$0 sm:$0xff]  ;;  %s384_s28 = sshll.u32 %s638_s4, 4  ;;  %s385_s28 = int_to_ptr.vmem [resolvable:$true] %s384_s28 }
  0x52   :  { %464 = vmatprep.subr.bf16.mxu0 %v636_v0  ;;  %s600_s6 = scalar_lea.vmem %s385_s28, 128  ;;  %p605_p5 = scmp.lt.s32.totalorder %s385_s28, %s385_s28 }
  0x53   :  { %p601_p4 = scmp.ne.s32.totalorder %s385_s28, %s600_s6  ;;  %p606_p6 = scmp.lt.s32.totalorder %s600_s6, %s600_s6 }
  0x54   :  { %447 = vmatpush3.bf16.msra.mxu1 %v494_v6 }
  0x55   :  { %448 = vmatprep.subr.bf16.mxu1 %v636_v0  ;;  %465 = vmatpush3.bf16.msra.mxu0 %v501_v13  ;;  %p607_p7 = por %p606_p6, %p605_p5 }
  0x56   :  { %466 = vmatprep.subr.bf16.mxu0 %v636_v0 }
  0x57   :  { %p608_p8 = pnand %p607_p7, %p601_p4 }
  0x58   :  { %449 = vmatpush3.bf16.msra.mxu1 %v495_v7 }
  0x59   :  { %450 = vmatprep.subr.bf16.mxu1 %v636_v0  ;;  %467 = vmatpush3.bf16.msra.mxu0 %v502_v14 }
  0x5a   :  { %468 = vmatprep.subr.bf16.mxu0 %v636_v0 }
  0x5c   :  { %451 = vmatpush3.bf16.msra.mxu1 %v496_v8 }
  0x5d   :  { %452 = vmatprep.subr.bf16.mxu1 %v636_v0  ;;  %469 = vmatpush3.bf16.msra.mxu0 %v503_v15 }
  0x5e   :  { %470 = vmatprep.subr.bf16.mxu0 %v636_v0 }
  0x60   :  { %453 = vmatpush3.bf16.msra.mxu1 %v497_v9 }
  0x61   :  { %454 = vmatprep.subr.bf16.mxu1 %v636_v0  ;;  %471 = vmatpush3.bf16.msra.mxu0 %v504_v16 }
  0x62   :  { %472 = vmatprep.subr.bf16.mxu0 %v636_v0 }
  0x64   :  { %455 = vmatpush3.bf16.msra.mxu1 %v498_v10 }
  0x65   :  { %456 = vmatprep.subr.bf16.mxu1 %v636_v0  ;;  %473 = vmatpush3.bf16.msra.mxu0 %v505_v17 }
  0x66   :  { %474 = vmatprep.subr.bf16.mxu0 %v636_v0 }
  0x68   :  { %457 = vmatpush3.bf16.msra.mxu1 %v499_v11 }
  0x69   :  { %475 = vmatpush3.bf16.msra.mxu0 %v506_v26 }
  0x6a   :  { %476 = vmatprep.subr.bf16.mxu0 %v636_v0 }
  0x6d   :  { %477 = vmatpush3.bf16.msra.mxu0 %v507_v27 }
 0x122   :  { %v136_v19 = vpop.f32.mrb[0].mxu0 }
 0x123   :  { %v137_v20 = vadd.f32 %v395_v18, %v136_v19  ;;  %v440_v21 = vpop.f32.mrb[1].mxu0 }
 0x124   :  { %v139_v22 = vpop.f32.mrb[2].mxu0 }
 0x125   :  { %v142_v23 = vmax.f32 %v137_v20, 0.0  ;;  %v441_v24 = vpop.f32.mrb[3].mxu0 }
 0x127   :  { %v143_v25 = vpack.c.bf16 %v142_v23, %v142_v23 }
 0x129   :  { %459 = vmatmul.mubr.bf16.vlgmr.msra.gmra.mrb[0].mxu1 %v143_v25 }
 0x1fc   :  { %v249_v29 = vpop.f32.mrb[0].mxu1 }
 0x1fd   :  { %v250_v30 = vadd.f32 %v398_v28, %v249_v29  ;;  %v460_v31 = vpop.f32.mrb[1].mxu1 }
 0x1fe   :  { %v252_v32 = vpop.f32.mrb[2].mxu1 }
 0x1ff   :  { %v255_v33 = vmax.f32 %v250_v30, 0.0  ;;  %v461_v34 = vpop.f32.mrb[3].mxu1 }
 0x201   :  { %v256_v35 = vpack.c.bf16 %v255_v33, %v255_v33 }
 0x203   :  { %479 = vmatmul.mubr.bf16.vlgmr.msra.gmra.mrb[4].mxu0 %v256_v35 }
 0x2d6   :  { %v362_v37 = vpop.f32.mrb[4].mxu0 }
 0x2d7   :  { %v363_v38 = vadd.f32 %v407_v36, %v362_v37  ;;  %v480_v39 = vpop.f32.mrb[5].mxu0 }
 0x2d8   :  { %v365_v40 = vpop.f32.mrb[6].mxu0 }
 0x2d9   :  { %368 = vmax.xlane.f32.xlu0 %v363_v38  ;;  %v481_v41 = vpop.f32.mrb[7].mxu0 }
 0x366   :  { %v369_v42 = vpop.xlane.xlu0 %368 }
 0x367   :  { %v370_v43 = vsub.f32 %v363_v38, %v369_v42 }
 0x369   :  { %v371_v44 = vmul.f32 1.442695, %v370_v43 }
 0x36b   :  { %508 = vpow2.f32 %v371_v44 }
 0x375   :  { %v509_v45 = vpop.eup %508 }
 0x376   :  { %373 = vadd.xlane.f32.xlu0 %v509_v45 }
 0x403   :  { %v374_v46 = vpop.xlane.xlu0 %373 }
 0x404   :  { %510 = vrcp.f32 %v374_v46 }
 0x40e   :  { %v511_v47 = vpop.eup %510 }
 0x40f   :  { %v376_v48 = vmul.f32 %v511_v47, %v509_v45 }
 0x411   :  { %377 = vst [vmem:[#allocation10] sm:$0xff] %v376_v48 }
 0x412   :  { %611 = shalt.err (!%p608_p8)
}
 0x413   :  { %s612_s8 = scalar_lea.hbm %s784_s7, 128 }
 0x414   :  { %p613_p9 = scmp.ne.s32.totalorder %s784_s7, %s612_s8  ;;  %p616_p10 = scmp.lt.u32.totalorder %s612_s8, %s784_s7 }
 0x416   :  { %p618_p11 = pnand %p616_p10, %p613_p9 }
 0x418   :  { %621 = shalt.err (!%p618_p11)
}
 0x419   :  { %387 = dma.vmem_to_hbm [thread:$0]  %s385_s28, 128, %s784_s7, [#allocation4]  }
 0x41a   :  { %628 = dma.done.wait [#allocation4], 128  }
 0x41b   :  { %629 = vsyncadd [#allocation4], 4294967168 }
 0x41c   :  { %391 = vsyncpa [#allocation3], 1 }
 0x41d   :  { %392 = vsyncpa [#allocation6], 1 }
 0x41e   :  { %393 = vsyncpa [#allocation9], 1 }
 0x41f   :  { %394 = vsyncpa [#allocation4], 1 }

</bundles_post_ra>
